<compile_context>
chip_gen: v7x
topology: tpu7x:2x2x1
jax: 0.10.0
libtpu: 0.0.40
codegen_flags: <defaults>
</compile_context>

<pallas_src>
import functools
import math

import jax
import jax.numpy as jnp
import numpy as np
from jax import lax
from jax.experimental import pallas as pl
from jax.experimental.pallas import tpu as pltpu

_LANES = 128
_SUBLANES = 8


def _loss_compose_kernel(scale_ref, loss_ref, out_ref, acc_ref, *,
                         n_chunks, chunk_rows, unroll):
    # scale_ref: VMEM (1, 128)           f32   per-lane 1/(2*ww), class = lane % C
    # loss_ref : VMEM (tile_rows, 128)   native dtype (streamed tile)
    # out_ref  : VMEM (8, 128)           f32   per-core partial-sum block
    # acc_ref  : VMEM (8, 128)           f32   per-core persistent accumulator
    i = pl.program_id(1)

    @pl.when(i == 0)
    def _():
        acc_ref[...] = jnp.zeros_like(acc_ref)

    def fold(start):
        # Load one native-tile chunk, upcast on the VPU, fold to (8, 128).
        v = loss_ref[pl.ds(start, chunk_rows), :].astype(jnp.float32)
        if chunk_rows == _SUBLANES:
            return v
        return v.reshape(chunk_rows // _SUBLANES, _SUBLANES, _LANES).sum(axis=0)

    def body(j, carry):
        step = chunk_rows * unroll
        base = pl.multiple_of(j * step, step)
        partial = fold(base)
        for u in range(1, unroll):                 # manual unroll, few vregs live
            partial = partial + fold(base + u * chunk_rows)
        acc_ref[...] += partial                    # one vst per `unroll` chunks
        return carry

    lax.fori_loop(0, n_chunks // unroll, body, 0)

    @pl.when(i == pl.num_programs(1) - 1)
    def _():
        # Scale is applied exactly once per core, at finalize.
        out_ref[...] = acc_ref[...] * scale_ref[...]


def loss_compose(loss, w, eta, *, tile_rows=4096, num_cores=2,
                 min_pallas_elements=1 << 20, force_pallas=False):
    """Pallas implementation of LossCompose.forward.

    loss: (..., n_class) array (any float dtype; streamed in native dtype)
    w   : (n_class,) parameter
    eta : python float / 0-d value (registered buffer in the torch module)
    """
    n_class = w.shape[0]
    assert loss.shape[-1] == n_class
    assert tile_rows > 0 and tile_rows % _SUBLANES == 0
    assert num_cores >= 1

    w32 = w.astype(jnp.float32)
    eta32 = jnp.float32(eta)
    ww = eta32 * eta32 + w32 * w32                 # (C,)
    inv2ww = 0.5 / ww                              # (C,)
    log_sum = jnp.sum(jnp.log1p(ww))               # scalar: sum_c log(1+ww_c)

    total = loss.size
    batch = total // n_class                       # number of leading elements

    def _finish(scaled_sum):
        return (scaled_sum + jnp.float32(batch) * log_sum) / jnp.float32(n_class)

    itemsize = jnp.dtype(loss.dtype).itemsize
    # Chunk = one native (sublane-packed) tile worth of rows: 8 f32 / 16 bf16.
    chunk_rows = max(_SUBLANES, 32 // max(1, itemsize))
    tile_rows = ((tile_rows + chunk_rows - 1) // chunk_rows) * chunk_rows

    lane_ok = (_LANES % n_class == 0) and (total % _LANES == 0)
    rows = total // _LANES if lane_ok else 0
    per_core_tiles = rows // (tile_rows * num_cores)
    use_pallas = lane_ok and per_core_tiles >= 1 and (
        force_pallas or total >= min_pallas_elements)

    if not use_pallas:
        # TODO(synk): totals not divisible by 128 (and tiny inputs) take the
        # fused-XLA path; a masked manual-DMA kernel could cover them without a
        # pad copy, but XLA's fused multiply-reduce is already near roofline.
        return _finish(jnp.sum(loss.astype(jnp.float32) * inv2ww))

    # ---- lane-dense layout: class = flat_index % C = lane % C (C | 128) ----
    reps = _LANES // n_class
    scale_row = jnp.tile(inv2ww, reps).reshape(1, _LANES)     # (1, 128) f32

    loss2d = loss.reshape(rows, _LANES)            # free: contiguous reshape
    kernel_rows = per_core_tiles * tile_rows * num_cores      # rows the grid covers

    n_chunks = tile_rows // chunk_rows
    unroll = math.gcd(n_chunks, 8)

    kernel = functools.partial(_loss_compose_kernel, n_chunks=n_chunks,
                               chunk_rows=chunk_rows, unroll=unroll)

    cost = pl.CostEstimate(
        flops=2 * kernel_rows * _LANES,
        transcendentals=0,
        bytes_accessed=(kernel_rows * _LANES * itemsize
                        + _LANES * 4
                        + num_cores * _SUBLANES * _LANES * 4))

    partials = pl.pallas_call(
        kernel,
        out_shape=jax.ShapeDtypeStruct((num_cores * _SUBLANES, _LANES),
                                       jnp.float32),
        grid=(num_cores, per_core_tiles),
        in_specs=[
            pl.BlockSpec((1, _LANES), lambda c, i: (0, 0)),            # scale row
            pl.BlockSpec((tile_rows, _LANES),
                         lambda c, i: (c * per_core_tiles + i, 0)),    # loss tiles
        ],
        out_specs=pl.BlockSpec((_SUBLANES, _LANES), lambda c, i: (c, 0)),
        scratch_shapes=[pltpu.VMEM((_SUBLANES, _LANES), jnp.float32)],
        compiler_params=pltpu.CompilerParams(
            dimension_semantics=("parallel", "arbitrary")),
        cost_estimate=cost,
    )(scale_row, loss2d)

    scaled_sum = jnp.sum(partials)

    # Ragged tail rows (< num_cores*tile_rows of them) folded by plain XLA —
    # no host-side pad / copy of the bulk input.
    if kernel_rows < rows:
        tail = loss2d[kernel_rows:].astype(jnp.float32)
        scaled_sum = scaled_sum + jnp.sum(tail * scale_row)

    return _finish(scaled_sum)


def _reference(loss, w, eta):
    ww = jnp.float32(eta) ** 2 + w.astype(jnp.float32) ** 2
    Loss = 1.0 / 2.0 / ww * loss.astype(jnp.float32) + jnp.log(1.0 + ww)
    return Loss.sum() / w.shape[0]


if __name__ == "__main__":
    key = jax.random.PRNGKey(0)
    k_loss, k_w, k_loss2 = jax.random.split(key, 3)

    n_class = 4
    eta = 0.001
    # torch module initializes w = ones; perturb deterministically so the
    # per-class weighting is exercised.
    w = jnp.ones((n_class,), dtype=jnp.float32) + \
        0.1 * jax.random.normal(k_w, (n_class,), dtype=jnp.float32)

    # (4, 16, 16, 4) -> 4096 elements = 32 lane-rows.  With tile_rows=8 and
    # num_cores=2 the grid is (2, 2): exercises per-core accumulator init,
    # carry across the "arbitrary" axis, and the per-core finalize blocks.
    loss = jax.random.uniform(k_loss, (4, 16, 16, n_class), dtype=jnp.float32)
    out = jax.block_until_ready(
        loss_compose(loss, w, eta, tile_rows=8, force_pallas=True))
    np.testing.assert_allclose(np.asarray(out),
                               np.asarray(_reference(loss, w, eta)),
                               rtol=1e-5, atol=1e-5)

    # Ragged shape: (3, 16, 16, 4) -> 24 rows; kernel covers 16 rows, the
    # remaining 8 rows go through the XLA tail fold (no pad copy anywhere).
    loss_r = jax.random.uniform(k_loss2, (3, 16, 16, n_class), dtype=jnp.float32)
    out_r = jax.block_until_ready(
        loss_compose(loss_r, w, eta, tile_rows=8, force_pallas=True))
    np.testing.assert_allclose(np.asarray(out_r),
                               np.asarray(_reference(loss_r, w, eta)),
                               rtol=1e-5, atol=1e-5)

    # bf16 streaming (native-dtype DMA, in-kernel upcast, 16-row chunks).
    out_bf = jax.block_until_ready(
        loss_compose(loss.astype(jnp.bfloat16), w, eta,
                     tile_rows=16, force_pallas=True))
    np.testing.assert_allclose(np.asarray(out_bf),
                               np.asarray(_reference(loss.astype(jnp.bfloat16),
                                                     w, eta)),
                               rtol=1e-4, atol=1e-4)

    # Tiny input exercises the pure-JAX fallback path (threshold dispatch).
    small = jax.random.uniform(jax.random.PRNGKey(1), (8, n_class),
                               dtype=jnp.float32)
    out_small = jax.block_until_ready(loss_compose(small, w, eta))
    np.testing.assert_allclose(np.asarray(out_small),
                               np.asarray(_reference(small, w, eta)),
                               rtol=1e-5, atol=1e-5)

    print("KERNEL_OK")
</pallas_src>

<mosaic_0001>
module attributes {stable_mosaic.version = 11 : i64} {
  func.func @_loss_compose_kernel(%arg0: i32, %arg1: i32, %arg2: memref<1x128xf32, #tpu.memory_space<vmem>>, %arg3: memref<8x128xf32, #tpu.memory_space<vmem>>, %arg4: memref<8x128xf32, #tpu.memory_space<vmem>>, %arg5: memref<8x128xf32, #tpu.memory_space<vmem>>) attributes {dimension_semantics = [#tpu.dimension_semantics<parallel>, #tpu.dimension_semantics<arbitrary>], iteration_bounds = array<i64: 2, 2>, scalar_prefetch = 0 : i64, scratch_operands = 1 : i64, tpu.core_type = #tpu.core_type<tc>, window_params = [{pipeline_mode = #tpu.pipeline_mode<synchronous>, transform_indices = @transform_0, window_bounds = array<i64: 1, 128>}, {transform_indices = @transform_1, window_bounds = array<i64: 8, 128>}, {transform_indices = @transform_2, window_bounds = array<i64: 8, 128>}]} {
    %c0_i32 = arith.constant 0 : i32
    %0 = arith.cmpi eq, %arg1, %c0_i32 : i32
    %1 = arith.extui %0 : i1 to i32
    %c0_i32_0 = arith.constant 0 : i32
    %2 = arith.cmpi ne, %1, %c0_i32_0 : i32
    scf.if %2 {
      %cst = arith.constant 0.000000e+00 : f32
      %13 = vector.broadcast %cst : f32 to vector<8x128xf32>
      %c0_8 = arith.constant 0 : index
      %c0_9 = arith.constant 0 : index
      %14 = vector.load %arg5[%c0_8, %c0_9] : memref<8x128xf32, #tpu.memory_space<vmem>>, vector<8x128xf32>
      tpu.vector_store %arg5[%c0_8, %c0_9], %13 {strides = array<i32>} : memref<8x128xf32, #tpu.memory_space<vmem>>, vector<8x128xf32>,
    } else {
    }
    %c0_i32_1 = arith.constant 0 : i32
    %c8_i32 = arith.constant 8 : i32
    %3 = arith.muli %c0_i32_1, %c8_i32 : i32
    %4 = tpu.assume_multiple %3, 8 : i32
    %5 = arith.index_cast %4 : i32 to index
    %c0 = arith.constant 0 : index
    %6 = vector.load %arg3[%5, %c0] : memref<8x128xf32, #tpu.memory_space<vmem>>, vector<8x128xf32>
    %c0_2 = arith.constant 0 : index
    %c0_3 = arith.constant 0 : index
    %7 = vector.load %arg5[%c0_2, %c0_3] : memref<8x128xf32, #tpu.memory_space<vmem>>, vector<8x128xf32>
    %8 = arith.addf %7, %6 : vector<8x128xf32>
    %c0_4 = arith.constant 0 : index
    %c0_5 = arith.constant 0 : index
    %9 = vector.load %arg5[%c0_4, %c0_5] : memref<8x128xf32, #tpu.memory_space<vmem>>, vector<8x128xf32>
    tpu.vector_store %arg5[%c0_4, %c0_5], %8 {strides = array<i32>} : memref<8x128xf32, #tpu.memory_space<vmem>>, vector<8x128xf32>,
    %c1_i32 = arith.constant 1 : i32
    %c1_i32_6 = arith.constant 1 : i32
    %10 = arith.cmpi eq, %arg1, %c1_i32_6 : i32
    %11 = arith.extui %10 : i1 to i32
    %c0_i32_7 = arith.constant 0 : i32
    %12 = arith.cmpi ne, %11, %c0_i32_7 : i32
    scf.if %12 {
      %c0_8 = arith.constant 0 : index
      %c0_9 = arith.constant 0 : index
      %13 = vector.load %arg5[%c0_8, %c0_9] : memref<8x128xf32, #tpu.memory_space<vmem>>, vector<8x128xf32>
      %c0_10 = arith.constant 0 : index
      %c0_11 = arith.constant 0 : index
      %14 = vector.load %arg2[%c0_10, %c0_11] : memref<1x128xf32, #tpu.memory_space<vmem>>, vector<1x128xf32>
      %15 = vector.broadcast %14 : vector<1x128xf32> to vector<8x128xf32>
      %16 = arith.mulf %13, %15 : vector<8x128xf32>
      %c0_12 = arith.constant 0 : index
      %c0_13 = arith.constant 0 : index
      %17 = vector.load %arg4[%c0_12, %c0_13] : memref<8x128xf32, #tpu.memory_space<vmem>>, vector<8x128xf32>
      tpu.vector_store %arg4[%c0_12, %c0_13], %16 {strides = array<i32>} : memref<8x128xf32, #tpu.memory_space<vmem>>, vector<8x128xf32>,
    } else {
    }
    return
  }
  func.func @transform_0(%arg0: i32, %arg1: i32) -> (i32, i32) {
    %c0_i32 = arith.constant 0 : i32
    %c0_i32_0 = arith.constant 0 : i32
    %c0_i32_1 = arith.constant 0 : i32
    return %c0_i32, %c0_i32_0 : i32, i32
  }
  func.func @transform_1(%arg0: i32, %arg1: i32) -> (i32, i32) {
    %c2_i32 = arith.constant 2 : i32
    %0 = arith.muli %arg0, %c2_i32 : i32
    %1 = arith.addi %0, %arg1 : i32
    %c0_i32 = arith.constant 0 : i32
    %c0_i32_0 = arith.constant 0 : i32
    return %1, %c0_i32 : i32, i32
  }
  func.func @transform_2(%arg0: i32, %arg1: i32) -> (i32, i32) {
    %c0_i32 = arith.constant 0 : i32
    %c0_i32_0 = arith.constant 0 : i32
    return %arg0, %c0_i32 : i32, i32
  }
}

</mosaic_0001>

<bundles_post_ra>
// kernel: tpu_custom_call.1
= control target key start
LH: loop header
LB: loop body
LE: loop exit
PB: predicated region body
PF: predicated region fallthrough
CT: control target
= control target key end

     0   :  { %s918_s0 = inlined_call_operand.hbm [shape: f32[1,128], index: 0, kind: input, shape index: {}]   ;;  %s919_s1 = inlined_call_operand.hbm [shape: f32[32,128], index: 1, kind: input, shape index: {}]   ;;  %s920_s2 = inlined_call_operand.hbm [shape: f32[16,128], index: 2, kind: output, shape index: {}]  }
   0x1   :  { %932 = sst [smem:[#allocation17_spill]] %s918_s0 }
   0x2   :  { %933 = sst [smem:[#allocation18_spill]] %s920_s2 }
   0x3   :  { %7 = vsyncpa [#allocation4], 0 }
   0x4   :  { %8 = vsyncpa [#allocation7], 0 }
   0x5   :  { %10 = vsyncpa [#allocation7 + $0x1], 0 }
   0x6   :  { %11 = vsyncpa [#allocation5], 0 }
   0x7   :  { %13 = vsyncpa [#allocation5 + $0x1], 0  ;;  %s664_s9 = smov 0   ;;  %s666_s10 = smov 0  }
   0x8   :  { %s668_s11 = smov 0   ;;  %s670_s12 = smov 0  }
   0x9   :  { %s672_s13 = smov 0   ;;  %s674_s14 = smov 0  }
   0xa   :  { %s676_s15 = smov 0   ;;  %s678_s16 = smov 0  }
   0xb   :  { %s680_s17 = smov 0   ;;  %s682_s18 = smov 0  }
   0xc   :  { %s684_s19 = smov 0  }
   0xd LB: > { %934 = sst [smem:[#allocation12_spill]] %s603_s9  ;;  %s324_s20 = sadd.s32 4294967295, %s643_s19   ;;  %s643_s19 = sphi %s684_s19, %s19_s19   ;;  %s639_s18 = sphi %s682_s18, %s967_s18   ;;  %s635_s17 = sphi %s680_s17, %s966_s17   ;;  %s631_s16 = sphi %s678_s16, %s965_s16   ;;  %s627_s15 = sphi %s676_s15, %s958_s15   ;;  %s623_s14 = sphi %s674_s14, %s964_s14   ;;  %s619_s13 = sphi %s672_s13, %s963_s13   ;;  %s615_s12 = sphi %s670_s12, %s962_s12   ;;  %s611_s11 = sphi %s668_s11, %s961_s11   ;;  %s607_s10 = sphi %s666_s10, %s960_s10   ;;  %s603_s9 = sphi %s664_s9, %s959_s9  }
   0xe   : > { %935 = sst [smem:[#allocation13_spill]] %s631_s16  ;;  %s325_s21 = sadd.s32 4294967294, %s643_s19  }
   0xf   : > { %936 = sst [smem:[#allocation14_spill]] %s635_s17  ;;  %p76_p0 = scmp.ne.s32.totalorder %s619_s13, %s615_s12 }
  0x10   : > { %p720_p1 = scmp.eq.s32.totalorder %s324_s20, 0  ;;  %p99_p2 = scmp.ne.s32.totalorder %s611_s11, %s607_s10 }
  0x11   : > { %p100_p4 = scmp.eq.s32.totalorder %s324_s20, 3  ;;  %p105_p5 = scmp.ne.s32.totalorder %s607_s10, %s603_s9 }
  0x12   : > { %s937_s22 = scalar_select %p720_p1, 1, 0 }
  0x13   : > { %p728_p3 = por %p720_p1, %p76_p0  ;;  %p106_p6 = scmp.eq.s32.totalorder %s325_s21, 3 }
  0x14   : > { %p734_p7 = por %p100_p4, %p99_p2  ;;  %p328_p8 = scmp.ge.s32.totalorder %s643_s19, 1 }
  0x15   : > { %s938_s23 = scalar_select %p728_p3, 1, 0 }
  0x16   : > { %s939_s24 = scalar_select %p734_p7, 1, 0 }
  0x17   : > { %p739_p9 = por %p106_p6, %p105_p5  ;;  %p113_p10 = scmp.lt.s32.totalorder %s643_s19, 5 }
  0x18   : > { %940 = sst [smem:[#allocation15_spill]] %s939_s24  ;;  %s645_s27 = smov [#allocation3]  }
  0x19   : > { %s941_s25 = scalar_select %p739_p9, 1, 0 }
  0x1a   : > { %p744_p11 = pnand %p328_p8, %p113_p10  ;;  %s126_s28 = sshll.u32 %s645_s27, 4  ;;  %s127_s28 = int_to_ptr.vmem [resolvable:$true] %s126_s28 }
  0x1b   : > { %942 = sst [smem:[#allocation16_spill]] %s941_s25  ;;  %s89_s29 = sadd.s32 1, %s611_s11 }
  0x1c   : > { %s943_s26 = scalar_select %p744_p11, 1, 0 }
  0x1d   : > { %p353_p12 = pneg %p744_p11  ;;  %s28_s3 = sadd.s32 1, %s635_s17 }
  0x1e   : > { %s945_s0 = sld [smem:[#allocation17_spill]] }
  0x1f   : > { %p753_p13 = pnand %p353_p12, %p720_p1 }
  0x21   : > { %p461_p2 = pneg %p753_p13 }
  0x24   : > { %s459_s6 = scalar_lea.hbm %s945_s0, 16 }
  0x25   : > { %p460_p0 = scmp.ne.s32.totalorder %s945_s0, %s459_s6  ;;  %p466_p6 = scmp.lt.u32.totalorder %s459_s6, %s945_s0 }
  0x27   : > { %p462_p4 = pnand %p461_p2, %p460_p0 }
  0x29   : > { %p463_p5 = pneg %p462_p4 }
  0x2b   : > { %p468_p8 = pnand %p466_p6, %p463_p5 }
  0x2d   : > { %471 = shalt.err (!%p468_p8)
}
  0x2e   : > { %s472_s21 = scalar_lea.vmem %s127_s28, 16  ;;  %s479_s27 = scalar_lea.vmem %s127_s28, 32 }
  0x2f   : > { %p473_p10 = scmp.ne.s32.totalorder %s127_s28, %s472_s21  ;;  %p480_p7 = scmp.lt.s32.totalorder %s127_s28, %s127_s28 }
  0x30   : > { %p481_p3 = scmp.lt.s32.totalorder %s479_s27, %s472_s21 }
  0x31   : > { %p475_p12 = pnand %p473_p10, %p461_p2 }
  0x32   : > { %p482_p1 = por %p481_p3, %p480_p7 }
  0x33   : > { %p476_p9 = pneg %p475_p12 }
  0x35   : > { %p483_p11 = pnand %p482_p1, %p476_p9 }
  0x37   : > { %486 = shalt.err (!%p483_p11)
}
  0x38   : > { %356 = dma.hbm_to_vmem [thread:$0]  (!%p753_p13), %s945_s0, 16, %s127_s28, [#allocation4]  }
  0x39   : > { %p29_p3 = scmp.ge.s32.totalorder %s28_s3, 2  ;;  %s31_s6 = sadd.s32 1, %s639_s18 }
  0x3a   : > { %s326_s7 = sshll.u32 %s639_s18, 1  ;;  %s63_s30 = sadd.s32 1, %s623_s14 }
  0x3b   : > { %s969_s3 = smov (%p29_p3, %s28_s3), 0  ;;  %s971_s6 = smov (!%p29_p3, %s31_s6), %s639_s18 }
  0x3c   : > { %p70_p1 = scmp.ne.s32.totalorder %s623_s14, %s619_s13  ;;  %p33_p7 = scmp.ge.s32.totalorder %s971_s6, 2 }
  0x3d   : > { %p71_p9 = scmp.eq.s32.totalorder %s643_s19, 0  ;;  %s57_s8 = sadd.s32 %s635_s17, %s326_s7 }
  0x3e   : > { %p366_p11 = scmp.lt.s32.totalorder %s643_s19, 4  ;;  %s973_s6 = smov (%p33_p7, %s971_s6), 0 }
  0x3f   : > { %p787_p13 = por %p71_p9, %p70_p1  ;;  %s137_s12 = sand.u32 1, %s623_s14  }
  0x40   : > { %s327_s20 = sshll.u32 %s973_s6, 1  ;;  %s86_s21 = ssub.s32 %s639_s18, %s973_s6 }
  0x41   : > { %s59_s27 = sadd.s32 %s327_s20, %s969_s3  ;;  %p87_p0 = scmp.eq.s32.totalorder %s86_s21, 0 }
  0x42   : > { %s60_s4 = ssub.s32 %s57_s8, %s59_s27  ;;  %s331_s5 = sshll.u32 %s137_s12, 3 }
  0x43   : > { %p61_p2 = scmp.eq.s32.totalorder %s60_s4, 0  ;;  %s333_s17 = sshll.u32 %s57_s8, 7 }
  0x44   : > { %s799_s7 = scalar_select %p87_p0, %s611_s11, %s89_s29  }
  0x45   : > { %s802_s0 = scalar_select %p61_p2, %s623_s14, %s63_s30  }
  0x46   : > { %s141_s25 = scalar_lea.vmem [#allocation6], %s331_s5  ;;  %s807_s16 = scalar_lea.hbm %s919_s1, %s333_s17 }
  0x47   : > { %s150_s9 = sshll.u32 %s141_s25, 4  ;;  %p815_p4 = pnand %p366_p11, %p787_p13  ;;  %s809_s9 = int_to_ptr.vmem [resolvable:$true] %s150_s9 }
  0x48   : > { %s138_s25 = scalar_lea.sflag [#allocation7], %s137_s12  ;;  %s487_s30 = scalar_lea.hbm %s807_s16, 128 }
  0x49   : > { %p488_p5 = scmp.ne.s32.totalorder %s807_s16, %s487_s30  ;;  %p489_p6 = pneg %p815_p4 }
  0x4a   : > { %s492_s24 = scalar_lea.hbm %s919_s1, 512  ;;  %p493_p12 = scmp.lt.u32.totalorder %s807_s16, %s919_s1 }
  0x4b   : > { %p490_p8 = pnand %p489_p6, %p488_p5  ;;  %p494_p3 = scmp.lt.u32.totalorder %s492_s24, %s487_s30 }
  0x4c   : > { %p496_p7 = scmp.lt.u32.totalorder %s487_s30, %s807_s16 }
  0x4d   : > { %p491_p10 = pneg %p490_p8  ;;  %p495_p1 = por %p494_p3, %p493_p12 }
  0x4f   : > { %p497_p9 = por %p496_p7, %p495_p1 }
  0x51   : > { %p498_p11 = pnand %p497_p9, %p491_p10 }
  0x53   : > { %501 = shalt.err (!%p498_p11)
}
  0x54   : > { %s502_s12 = scalar_lea.vmem %s809_s9, 128  ;;  %s646_s20 = smov [#allocation6]  }
  0x55   : > { %p503_p13 = scmp.ne.s32.totalorder %s809_s9, %s502_s12  ;;  %s507_s21 = sshll.u32 %s646_s20, 4  ;;  %s508_s21 = int_to_ptr.vmem [resolvable:$false] %s507_s21 }
  0x56   : > { %s509_s27 = scalar_lea.vmem %s508_s21, 256  ;;  %p510_p5 = scmp.lt.s32.totalorder %s809_s9, %s508_s21 }
  0x57   : > { %p505_p0 = pnand %p503_p13, %p489_p6  ;;  %p511_p8 = scmp.lt.s32.totalorder %s509_s27, %s502_s12 }
  0x59   : > { %p506_p2 = pneg %p505_p0  ;;  %p512_p12 = por %p511_p8, %p510_p5 }
  0x5b   : > { %p513_p3 = pnand %p512_p12, %p506_p2 }
  0x5d   : > { %516 = shalt.err (!%p513_p3)
}
  0x5e   : > { %360 = dma.hbm_to_vmem [thread:$0]  (!%p815_p4), %s807_s16, 128, %s809_s9, %s138_s25  }
  0x5f   : > { %p948_p10 = scmp.ne.s32.totalorder %s943_s26, 0 }
  0x60   : > { %p949_p6 = scmp.ne.s32.totalorder (!%p948_p10), %s937_s22, 0 }
  0x61   : > { %159 = sbr.rel (%p948_p10) target bundleno = 159 (0x9f), region = 28 }
  0x68   : > { %590 = dma.done.wait (%p949_p6), [#allocation4], 16  }
  0x69   : > { %592 = vsyncadd (%p949_p6), [#allocation4], 4294967280  ;;  %s165_s4 = sand.u32 1, %s619_s13   ;;  %p950_p1 = scmp.ne.s32.totalorder %s938_s23, 0 }
  0x6a   : > { %s336_s5 = sshll.u32 %s165_s4, 3  ;;  %s166_s30 = scalar_lea.sflag [#allocation7], %s165_s4 }
  0x6b   : > { %s169_s2 = scalar_lea.vmem [#allocation6], %s336_s5 }
  0x6c   : > { %594 = dma.done.wait (%p950_p1), %s166_s30, 128  }
  0x6d   : > { %596 = vsyncadd (%p950_p1), %s166_s30, 4294967168  ;;  %s187_s9 = sand.u32 1, %s607_s10   ;;  %p338_p4 = scmp.ne.s32.totalorder %s627_s15, 0 }
  0x6e   : > { %s337_s16 = sshll.u32 %s187_s9, 3  ;;  %v647_v0 = vmov (!%p338_p4), 0.0  }
  0x6f   : > { %s189_s26 = scalar_lea.vmem [#allocation8], %s337_s16  ;;  %195 = sbr.rel (%p338_p4) target bundleno = 118 (0x76), region = 40  ;;  %196 = vst [vmem:[#allocation2] sm:$0xff] (!%p338_p4), %v647_v0 }
  0x76 PF: > { %v197_v1 = vld [vmem:[%s169_s2] sm:$0xff]  ;;  %v198_v2 = vld [vmem:[#allocation2] sm:$0xff]  ;;  %p339_p7 = scmp.ne.s32.totalorder %s627_s15, 1 }
  0x77   : > { %v199_v3 = vadd.f32 %v198_v2, %v197_v1  ;;  %v340_v5 = vld [vmem:[#allocation3] ss:$0 sm:$0xff] (!%p339_p7) }
  0x78   : > { %204 = sbr.rel (%p339_p7) target bundleno = 132 (0x84), region = 44 }
  0x79   : > { %200 = vst [vmem:[#allocation2] sm:$0xff] %v199_v3 }
  0x80   : > { %v205_v4 = vld [vmem:[#allocation2] sm:$0xff] }
  0x81   : > { %v213_v6 = vmul.f32 %v340_v5, %v205_v4 }
  0x83   : > { %214 = vst [vmem:[%s189_s26] sm:$0xff] %v213_v6 }
  0x84 PF: > { %s951_s22 = sld [smem:[#allocation13_spill]]  ;;  %s952_s23 = sld [smem:[#allocation15_spill]] }
  0x85   : > { %s953_s24 = sld [smem:[#allocation18_spill]]  ;;  %s229_s28 = sshll.u32 %s189_s26, 4  ;;  %s230_s28 = int_to_ptr.vmem [resolvable:$true] %s229_s28 }
  0x86   : > { %s216_s12 = scalar_lea.sflag [#allocation5], %s187_s9  ;;  %s517_s20 = scalar_lea.vmem %s230_s28, 128 }
  0x87   : > { %p518_p9 = scmp.ne.s32.totalorder %s230_s28, %s517_s20  ;;  %s648_s15 = smov [#allocation8]  }
  0x88   : > { %s521_s21 = sshll.u32 %s648_s15, 4  ;;  %s522_s21 = int_to_ptr.vmem [resolvable:$false] %s521_s21 }
  0x89   : > { %s523_s27 = scalar_lea.vmem %s522_s21, 256  ;;  %p524_p2 = scmp.lt.s32.totalorder %s230_s28, %s522_s21 }
  0x8a   : > { %s342_s29 = sshll.u32 %s951_s22, 7  ;;  %p954_p11 = scmp.ne.s32.totalorder %s952_s23, 0 }
  0x8b   : > { %s862_s8 = scalar_lea.hbm %s953_s24, %s342_s29  ;;  %p525_p5 = scmp.lt.s32.totalorder %s523_s27, %s517_s20 }
  0x8c   : > { %p519_p13 = pnand %p518_p9, %p954_p11 }
  0x8d   : > { %p526_p8 = por %p525_p5, %p524_p2 }
  0x8e   : > { %p520_p0 = pneg %p519_p13 }
  0x90   : > { %p527_p12 = pnand %p526_p8, %p520_p0 }
  0x92   : > { %530 = shalt.err (!%p527_p12)
}
  0x93   : > { %s531_s4 = scalar_lea.hbm %s862_s8, 128  ;;  %s535_s2 = scalar_lea.hbm %s953_s24, 256 }
  0x94   : > { %p532_p3 = scmp.ne.s32.totalorder %s862_s8, %s531_s4  ;;  %p536_p1 = scmp.lt.u32.totalorder %s862_s8, %s953_s24 }
  0x95   : > { %p537_p4 = scmp.lt.u32.totalorder %s535_s2, %s531_s4  ;;  %p539_p9 = scmp.lt.u32.totalorder %s531_s4, %s862_s8 }
  0x96   : > { %p533_p10 = pnand %p532_p3, %p954_p11 }
  0x97   : > { %p538_p7 = por %p537_p4, %p536_p1 }
  0x98   : > { %p534_p6 = pneg %p533_p10 }
  0x99   : > { %p540_p13 = por %p539_p9, %p538_p7 }
  0x9b   : > { %p541_p0 = pnand %p540_p13, %p534_p6 }
  0x9d   : > { %544 = shalt.err (!%p541_p0)
}
  0x9e   : > { %351 = dma.vmem_to_hbm [thread:$0]  (%p954_p11), %s230_s28, 128, %s862_s8, %s216_s12  }
  0x9f PF: > { %s955_s26 = sld [smem:[#allocation12_spill]]  ;;  %s956_s22 = sld [smem:[#allocation16_spill]] }
  0xa0   : > { %p368_p2 = scmp.ge.s32.totalorder %s643_s19, 2 }
  0xa5   : > { %s241_s29 = sand.u32 1, %s955_s26   ;;  %p957_p5 = scmp.ne.s32.totalorder %s956_s22, 0 }
  0xa6   : > { %s242_s25 = scalar_lea.sflag [#allocation5], %s241_s29 }
  0xa7   : > { %p362_p8 = pnand %p368_p2, %p957_p5 }
  0xa9   : > { %598 = dma.done.wait (!%p362_p8), %s242_s25, 128  }
  0xaa   : > { %600 = vsyncadd (!%p362_p8), %s242_s25, 4294967168  ;;  %s19_s19 = sadd.s32 1, %s643_s19   ;;  %s958_s15 = sld [smem:[#allocation14_spill]] }
  0xab   : > { %p16_p12 = scmp.ge.s32.totalorder %s19_s19, 6   ;;  %s959_s9 = smov %s607_s10 }
  0xac   : > { %s960_s10 = smov %s611_s11  ;;  %s961_s11 = smov %s799_s7 }
  0xad   : > { %s962_s12 = smov %s619_s13  ;;  %s963_s13 = smov %s623_s14 }
  0xae   : > { %s964_s14 = smov %s802_s0  ;;  %s965_s16 = smov %s639_s18 }
  0xaf   : > { %s966_s17 = smov %s969_s3  ;;  %s967_s18 = smov %s973_s6 }
  0xb0   :  { %18 = sbr.rel (!%p16_p12) target bundleno = 13 (0xd), region = 86 }
  0xb7   :  { %247 = vsyncpa [#allocation4], 1 }
  0xb8   :  { %249 = vsyncpa [#allocation4 + $0x1], 1 }
  0xb9   :  { %250 = vsyncpa [#allocation7], 1 }
  0xba   :  { %252 = vsyncpa [#allocation7 + $0x1], 1 }
  0xbb   :  { %253 = vsyncpa [#allocation5], 1 }
  0xbc   :  { %255 = vsyncpa [#allocation5 + $0x1], 1 }

</bundles_post_ra>
